<compile_context>
chip_gen: v6e
topology: v6e:2x2x1
jax: 0.10.0
libtpu: 0.0.40
codegen_flags: <defaults>
</compile_context>

<pallas_src>
import jax
import jax.numpy as jnp
from jax.experimental import pallas as pl
from jax.experimental.pallas import tpu as pltpu  # noqa: F401  (kept for TPU-specific tuning hooks)

# Small, forward-implied shapes.
B = 2                      # batch
D = 16                     # input feature dim
A = 8                      # action dim (size of action_probs)
T = 3                      # thought_steps
D_MAX = D + (T - 1) * A    # feature width after all concatenations (= 32)


def cot_kernel(x_ref, w_ref, b_ref, o_ref):
    """All `thought_steps` of the chain-of-thought loop, logits kept in registers.

    x_ref : (B, D)       input features
    w_ref : (D_MAX, A)   policy weight covering the max grown width
    b_ref : (1, A)       policy bias
    o_ref : (B, A)       averaged action probabilities (output)
    """
    x = x_ref[...]
    w = w_ref[...]
    b = b_ref[...]

    # Base logits: the original D features contribute identically at every
    # step, so compute their contribution (and the bias) exactly once.
    logits = jnp.dot(x, w[:D, :], preferred_element_type=jnp.float32) + b

    acc = jnp.zeros((B, A), jnp.float32)
    for t in range(T):  # static unrolled loop: thought_steps is a Python int
        # Numerically stable softmax; reciprocal on the EUP (approx vrcp).
        m = jnp.max(logits, axis=-1, keepdims=True)
        e = jnp.exp(logits - m)
        probs = e * pl.reciprocal(jnp.sum(e, axis=-1, keepdims=True), approx=True)
        acc = acc + probs
        if t < T - 1:
            # update_input_with_thought: appending probs to x and multiplying
            # by the zero-padded weight == adding probs @ W_t to the running
            # logits.  Row offsets D + t*A (16, 24) are sublane-tile aligned.
            w_t = w[D + t * A: D + (t + 1) * A, :]
            logits = logits + jnp.dot(probs, w_t, preferred_element_type=jnp.float32)

    # final_action_probs = sum(thought_process) / thought_steps
    o_ref[...] = acc * (1.0 / T)


def chain_of_thought_policy(x, w, b):
    """Wrapper: single-program pallas_call — at B=2 everything fits in a sliver
    of one vreg, so the kernel is launch-overhead bound and a grid would only
    add per-step overhead."""
    # TODO(synk): for a real batched workload, add a grid over batch with a
    # sublane-multiple tile, dimension_semantics=("parallel",) (2 TCs on v7x),
    # a lane-dense (A, B_tile) output layout, and size tiles against v7x's
    # 64 MiB VMEM (vmem_limit_bytes if above the 32 MiB scoped default).
    return pl.pallas_call(
        cot_kernel,
        out_shape=jax.ShapeDtypeStruct((B, A), jnp.float32),
        in_specs=[
            pl.BlockSpec((B, D), lambda: (0, 0)),
            pl.BlockSpec((D_MAX, A), lambda: (0, 0)),
            pl.BlockSpec((1, A), lambda: (0, 0)),
        ],
        out_specs=pl.BlockSpec((B, A), lambda: (0, 0)),
    )(x, w, b)


def reference_policy(x, w, b):
    """Pure-JAX reference with identical semantics (for verification)."""
    thought_process = []
    xc = x
    for _ in range(T):
        pad = D_MAX - xc.shape[-1]
        xp = jnp.pad(xc, ((0, 0), (0, pad)))
        probs = jax.nn.softmax(xp @ w + b, axis=-1)
        thought_process.append(probs)
        xc = jnp.concatenate([xc, probs], axis=-1)   # update_input_with_thought
    return sum(thought_process) / T


if __name__ == "__main__":
    key = jax.random.PRNGKey(0)
    kx, kw, kb = jax.random.split(key, 3)

    x = jax.random.normal(kx, (B, D), dtype=jnp.float32)
    # Deterministic parameter init for the synthetic transformer_policy.
    w = 0.1 * jax.random.normal(kw, (D_MAX, A), dtype=jnp.float32)
    b = 0.1 * jax.random.normal(kb, (1, A), dtype=jnp.float32)

    out = jax.block_until_ready(chain_of_thought_policy(x, w, b))
    ref = reference_policy(x, w, b)

    assert out.shape == (B, A)
    # approx=True reciprocal (EUP vrcp) is slightly looser than the exact
    # divide in the reference, hence the 1e-3 tolerance (a wrong W_t slice
    # offset would still blow well past this).
    assert jnp.allclose(out, ref, atol=1e-3, rtol=1e-3), (out, ref)

    print("KERNEL_OK")
</pallas_src>

<mosaic_0001>
module attributes {stable_mosaic.version = 11 : i64} {
  func.func @cot_kernel(%arg0: memref<2x16xf32, #tpu.memory_space<vmem>>, %arg1: memref<32x8xf32, #tpu.memory_space<vmem>>, %arg2: memref<1x8xf32, #tpu.memory_space<vmem>>, %arg3: memref<2x8xf32, #tpu.memory_space<vmem>>) attributes {dimension_semantics = [], scalar_prefetch = 0 : i64, scratch_operands = 0 : i64, tpu.core_type = #tpu.core_type<tc>} {
    %c0 = arith.constant 0 : index
    %c0_0 = arith.constant 0 : index
    %0 = vector.load %arg0[%c0, %c0_0] : memref<2x16xf32, #tpu.memory_space<vmem>>, vector<2x16xf32>
    %c0_1 = arith.constant 0 : index
    %c0_2 = arith.constant 0 : index
    %1 = vector.load %arg1[%c0_1, %c0_2] : memref<32x8xf32, #tpu.memory_space<vmem>>, vector<32x8xf32>
    %c0_3 = arith.constant 0 : index
    %c0_4 = arith.constant 0 : index
    %2 = vector.load %arg2[%c0_3, %c0_4] : memref<1x8xf32, #tpu.memory_space<vmem>>, vector<1x8xf32>
    %3 = vector.extract_strided_slice %1 {offsets = [0, 0], sizes = [16, 8], strides = [1, 1]} : vector<32x8xf32> to vector<16x8xf32>
    %cst = arith.constant dense<0.000000e+00> : vector<2x8xf32>
    %4 = tpu.matmul %0, %3, %cst {dimension_numbers = #tpu.dot_dimension_numbers<[1], [0], [0], [1], [0, 0, 1, 1], [], []>} : vector<2x16xf32>, vector<16x8xf32>, vector<2x8xf32> -> vector<2x8xf32>
    %5 = vector.broadcast %2 : vector<1x8xf32> to vector<2x8xf32>
    %6 = arith.addf %4, %5 : vector<2x8xf32>
    %cst_5 = arith.constant 0.000000e+00 : f32
    %7 = vector.broadcast %cst_5 : f32 to vector<2x8xf32>
    %cst_6 = arith.constant dense<0xFF800000> : vector<2xf32>
    %8 = vector.multi_reduction <maximumf>, %6, %cst_6 [1] : vector<2x8xf32> to vector<2xf32>
    %9 = vector.shape_cast %8 : vector<2xf32> to vector<2x1xf32>
    %10 = vector.broadcast %9 : vector<2x1xf32> to vector<2x8xf32>
    %11 = arith.subf %6, %10 : vector<2x8xf32>
    %12 = math.exp %11 : vector<2x8xf32>
    %cst_7 = arith.constant dense<0.000000e+00> : vector<2xf32>
    %13 = vector.multi_reduction <add>, %12, %cst_7 [1] : vector<2x8xf32> to vector<2xf32>
    %14 = vector.shape_cast %13 : vector<2xf32> to vector<2x1xf32>
    %15 = tpu.reciprocal %14 {approx = true} : vector<2x1xf32> -> vector<2x1xf32>
    %16 = vector.broadcast %15 : vector<2x1xf32> to vector<2x8xf32>
    %17 = arith.mulf %12, %16 : vector<2x8xf32>
    %18 = arith.addf %7, %17 : vector<2x8xf32>
    %19 = vector.extract_strided_slice %1 {offsets = [16, 0], sizes = [8, 8], strides = [1, 1]} : vector<32x8xf32> to vector<8x8xf32>
    %cst_8 = arith.constant dense<0.000000e+00> : vector<2x8xf32>
    %20 = tpu.matmul %17, %19, %cst_8 {dimension_numbers = #tpu.dot_dimension_numbers<[1], [0], [0], [1], [0, 0, 1, 1], [], []>} : vector<2x8xf32>, vector<8x8xf32>, vector<2x8xf32> -> vector<2x8xf32>
    %21 = arith.addf %6, %20 : vector<2x8xf32>
    %cst_9 = arith.constant dense<0xFF800000> : vector<2xf32>
    %22 = vector.multi_reduction <maximumf>, %21, %cst_9 [1] : vector<2x8xf32> to vector<2xf32>
    %23 = vector.shape_cast %22 : vector<2xf32> to vector<2x1xf32>
    %24 = vector.broadcast %23 : vector<2x1xf32> to vector<2x8xf32>
    %25 = arith.subf %21, %24 : vector<2x8xf32>
    %26 = math.exp %25 : vector<2x8xf32>
    %cst_10 = arith.constant dense<0.000000e+00> : vector<2xf32>
    %27 = vector.multi_reduction <add>, %26, %cst_10 [1] : vector<2x8xf32> to vector<2xf32>
    %28 = vector.shape_cast %27 : vector<2xf32> to vector<2x1xf32>
    %29 = tpu.reciprocal %28 {approx = true} : vector<2x1xf32> -> vector<2x1xf32>
    %30 = vector.broadcast %29 : vector<2x1xf32> to vector<2x8xf32>
    %31 = arith.mulf %26, %30 : vector<2x8xf32>
    %32 = arith.addf %18, %31 : vector<2x8xf32>
    %33 = vector.extract_strided_slice %1 {offsets = [24, 0], sizes = [8, 8], strides = [1, 1]} : vector<32x8xf32> to vector<8x8xf32>
    %cst_11 = arith.constant dense<0.000000e+00> : vector<2x8xf32>
    %34 = tpu.matmul %31, %33, %cst_11 {dimension_numbers = #tpu.dot_dimension_numbers<[1], [0], [0], [1], [0, 0, 1, 1], [], []>} : vector<2x8xf32>, vector<8x8xf32>, vector<2x8xf32> -> vector<2x8xf32>
    %35 = arith.addf %21, %34 : vector<2x8xf32>
    %cst_12 = arith.constant dense<0xFF800000> : vector<2xf32>
    %36 = vector.multi_reduction <maximumf>, %35, %cst_12 [1] : vector<2x8xf32> to vector<2xf32>
    %37 = vector.shape_cast %36 : vector<2xf32> to vector<2x1xf32>
    %38 = vector.broadcast %37 : vector<2x1xf32> to vector<2x8xf32>
    %39 = arith.subf %35, %38 : vector<2x8xf32>
    %40 = math.exp %39 : vector<2x8xf32>
    %cst_13 = arith.constant dense<0.000000e+00> : vector<2xf32>
    %41 = vector.multi_reduction <add>, %40, %cst_13 [1] : vector<2x8xf32> to vector<2xf32>
    %42 = vector.shape_cast %41 : vector<2xf32> to vector<2x1xf32>
    %43 = tpu.reciprocal %42 {approx = true} : vector<2x1xf32> -> vector<2x1xf32>
    %44 = vector.broadcast %43 : vector<2x1xf32> to vector<2x8xf32>
    %45 = arith.mulf %40, %44 : vector<2x8xf32>
    %46 = arith.addf %32, %45 : vector<2x8xf32>
    %cst_14 = arith.constant 0.333333343 : f32
    %47 = vector.broadcast %cst_14 : f32 to vector<2x8xf32>
    %48 = arith.mulf %46, %47 : vector<2x8xf32>
    %c0_15 = arith.constant 0 : index
    %c0_16 = arith.constant 0 : index
    %49 = vector.load %arg3[%c0_15, %c0_16] : memref<2x8xf32, #tpu.memory_space<vmem>>, vector<2x8xf32>
    tpu.vector_store %arg3[%c0_15, %c0_16], %48 {strides = array<i32>} : memref<2x8xf32, #tpu.memory_space<vmem>>, vector<2x8xf32>,
    return
  }
}

</mosaic_0001>

<bundles_post_ra>
// kernel: tpu_custom_call.1
= control target key start
LH: loop header
LB: loop body
LE: loop exit
PB: predicated region body
PF: predicated region fallthrough
CT: control target
= control target key end

     0   :  { %v368_v1 = vmov 0.0   ;;  %vm369_vm0 = vmmov 0   ;;  %s424_s0 = inlined_call_operand.vmem [shape: f32[2,16], index: 0, kind: input, shape index: {}]   ;;  %s425_s1 = inlined_call_operand.vmem [shape: f32[32,8], index: 1, kind: input, shape index: {}]   ;;  %s426_s2 = inlined_call_operand.vmem [shape: f32[1,8], index: 2, kind: input, shape index: {}]   ;;  %s427_s3 = inlined_call_operand.hbm [shape: f32[2,8], index: 3, kind: output, shape index: {}]  }
   0x1   :  { %v17_v0 = vld [vmem:[%s425_s1 + $0x8] sm:$0xff]  ;;  %314 = vmatprep.subr.mxu0 %v368_v1  ;;  %v16_v2 = vld [vmem:[%s425_s1] sm:$0xff]  ;;  %318 = vmatprep.mubr.msk.f32.mxu0 %vm369_vm0, %v368_v1 }
   0x2   :  { %8 = vsyncpa [#allocation3], 0  ;;  %315 = vmatpush3.msra.mxu0 %v17_v0  ;;  %v15_v3 = vld [vmem:[%s424_s0] sm:$0x3]  ;;  %vm27_vm1 = vcmask 130048   ;;  %321 = vmatprep.subr.mxu1 %v368_v1  ;;  %vm101_vm2 = vcmask 58368  }
   0x3   :  { %316 = vmatprep.subr.mxu0 %v368_v1  ;;  %323 = vmatprep.mubr.msk.f32.mxu1 %vm369_vm0, %v368_v1  ;;  %v303_v4 = vld [vmem:[%s426_s2] ss:$0 sm:$0xff]  ;;  %v18_v14 = vld [vmem:[%s425_s1 + $0x10] sm:$0xff]  ;;  %vm114_vm3 = vcmask 64512   ;;  %v19_v27 = vld [vmem:[%s425_s1 + $0x18] sm:$0xff]  ;;  %s370_s1 = smov [#allocation2]  }
   0x4   :  { %317 = vmatpush3.msra.mxu0 %v16_v2  ;;  %322 = vmatpush3.msra.mxu1 %v18_v14  ;;  %s295_s22 = sshll.u32 %s370_s1, 4  ;;  %s296_s22 = int_to_ptr.vmem [resolvable:$true] %s295_s22 }
   0x5   :  { %319 = vmatmul.mubr.msk.f32.vlgmr.msra.gmra.mxu0 %vm27_vm1, %v15_v3  ;;  %326 = vmatprep.subr.mxu1 %v368_v1  ;;  %s346_s23 = scalar_lea.vmem %s296_s22, 32  ;;  %p351_p1 = scmp.lt.s32.totalorder %s296_s22, %s296_s22 }
   0x6   :  { %p347_p0 = scmp.ne.s32.totalorder %s296_s22, %s346_s23  ;;  %p352_p2 = scmp.lt.s32.totalorder %s346_s23, %s346_s23 }
   0x8   :  { %p353_p3 = por %p352_p2, %p351_p1 }
   0xa   :  { %p354_p4 = pnand %p353_p3, %p347_p0 }
  0xc5   :  { %v97_v5 = vpop.f32.mrf.mxu0 }
  0xc6   :  { %v98_v6 = vadd.f32 %v303_v4, %v97_v5 }
  0xc7   :  { %v320_v7 = vpop.f32.mrf.mxu0 }
  0xc8   :  { %v102_v8 = vsel %vm101_vm2, %v98_v6, -inf }
  0xc9   :  { %103 = vmax.xlane.f32.xlu0 %v102_v8 }
 0x152   :  { %v104_v9 = vpop.xlane.xlu0 %103 }
 0x153   :  { %v105_v10 = vsub.f32 %v98_v6, %v104_v9 }
 0x155   :  { %v106_v11 = vmul.f32 1.442695, %v105_v10 }
 0x157   :  { %334 = vpow2.f32 %v106_v11 }
 0x164   :  { %v335_v12 = vpop.eup %334 }
 0x165   :  { %v108_v13 = vsel %vm101_vm2, %v335_v12, 0.0 }
 0x166   :  { %109 = vadd.xlane.f32.xlu0 %v108_v13 }
 0x1ef   :  { %v110_v15 = vpop.xlane.xlu0 %109 }
 0x1f0   :  { %336 = vrcp.f32 %v110_v15 }
 0x1fd   :  { %v337_v16 = vpop.eup %336 }
 0x1fe   :  { %v112_v17 = vmul.f32 %v337_v16, %v335_v12 }
 0x200   :  { %324 = vmatmul.mubr.msk.f32.vlgmr.msra.gmra.mxu1 %vm114_vm3, %v112_v17 }
 0x201   :  { %328 = vmatprep.mubr.msk.f32.mxu1 %vm369_vm0, %v368_v1  ;;  %327 = vmatpush3.msra.mxu1 %v19_v27 }
 0x2c0   :  { %v184_v18 = vpop.f32.mrf.mxu1 }
 0x2c1   :  { %v188_v19 = vadd.f32 %v184_v18, %v98_v6 }
 0x2c2   :  { %v325_v20 = vpop.f32.mrf.mxu1 }
 0x2c3   :  { %v189_v21 = vsel %vm101_vm2, %v188_v19, -inf }
 0x2c4   :  { %190 = vmax.xlane.f32.xlu1 %v189_v21 }
 0x34d   :  { %v191_v22 = vpop.xlane.xlu1 %190 }
 0x34e   :  { %v192_v23 = vsub.f32 %v188_v19, %v191_v22 }
 0x350   :  { %v193_v24 = vmul.f32 1.442695, %v192_v23 }
 0x352   :  { %338 = vpow2.f32 %v193_v24 }
 0x35f   :  { %v339_v25 = vpop.eup %338 }
 0x360   :  { %v195_v26 = vsel %vm101_vm2, %v339_v25, 0.0 }
 0x361   :  { %196 = vadd.xlane.f32.xlu1 %v195_v26 }
 0x3ea   :  { %v197_v28 = vpop.xlane.xlu1 %196 }
 0x3eb   :  { %340 = vrcp.f32 %v197_v28 }
 0x3f8   :  { %v341_v29 = vpop.eup %340 }
 0x3f9   :  { %v199_v30 = vmul.f32 %v341_v29, %v339_v25 }
 0x3fb   :  { %329 = vmatmul.mubr.msk.f32.vlgmr.msra.gmra.mxu1 %vm114_vm3, %v199_v30  ;;  %v200_v42 = vadd.f32 %v199_v30, %v112_v17 }
 0x4bb   :  { %v270_v31 = vpop.f32.mrf.mxu1 }
 0x4bc   :  { %v274_v32 = vadd.f32 %v270_v31, %v188_v19 }
 0x4bd   :  { %v330_v33 = vpop.f32.mrf.mxu1 }
 0x4be   :  { %v275_v34 = vsel %vm101_vm2, %v274_v32, -inf }
 0x4bf   :  { %276 = vmax.xlane.f32.xlu0 %v275_v34 }
 0x548   :  { %v277_v35 = vpop.xlane.xlu0 %276 }
 0x549   :  { %v278_v36 = vsub.f32 %v274_v32, %v277_v35 }
 0x54b   :  { %v279_v37 = vmul.f32 1.442695, %v278_v36 }
 0x54d   :  { %342 = vpow2.f32 %v279_v37 }
 0x55a   :  { %v343_v38 = vpop.eup %342 }
 0x55b   :  { %v281_v39 = vsel %vm101_vm2, %v343_v38, 0.0 }
 0x55c   :  { %282 = vadd.xlane.f32.xlu1 %v281_v39 }
 0x5e5   :  { %v283_v40 = vpop.xlane.xlu1 %282 }
 0x5e6   :  { %344 = vrcp.f32 %v283_v40 }
 0x5f3   :  { %v345_v41 = vpop.eup %344 }
 0x5f4   :  { %v285_v43 = vmul.f32 %v345_v41, %v343_v38 }
 0x5f6   :  { %v286_v44 = vadd.f32 %v285_v43, %v200_v42 }
 0x5f8   :  { %v287_v45 = vmul.f32 0.33333334, %v286_v44 }
 0x5fa   :  { %288 = vst.msk [vmem:[#allocation2] sm:$0x3] %vm101_vm2, %v287_v45 }
 0x5fb   :  { %357 = shalt.err (!%p354_p4)
}
 0x5fc   :  { %298 = dma.vmem_to_hbm [thread:$0]  %s296_s22, 32, %s427_s3, [#allocation3]  }
 0x5fd   :  { %366 = dma.done.wait [#allocation3], 32  }
 0x5fe   :  { %367 = vsyncadd [#allocation3], 4294967264 }
 0x5ff   :  { %302 = vsyncpa [#allocation3], 1 }

</bundles_post_ra>
